<compile_context>
chip_gen: v7x
topology: tpu7x:2x2x1
jax: 0.10.0
libtpu: 0.0.40
codegen_flags: <defaults>
</compile_context>

<pallas_src>
import jax
import jax.numpy as jnp
from jax import lax
from jax.experimental import pallas as pl
from jax.experimental.pallas import tpu as pltpu

LAMBDA_REG = 1.0
_LANE = 128
# Double-buffered working-set budget; conservative enough for v7x (64 MiB VMEM)
# and below the v5e 16 MiB scoped default once headroom is accounted for.
_VMEM_WORKING_SET_BUDGET = 12 * 1024 * 1024


def _detection_loss_kernel(logits_ref, pred_ref, tcls_ref, tbbox_ref, out_ref):
    # Batch is on the lane axis; feature axes (C, M, 4) are on sublanes.
    logits = logits_ref[...].astype(jnp.float32)   # (C, T)
    pred = pred_ref[...].astype(jnp.float32)       # (4, T)
    tcls = tcls_ref[...]                           # (M, T) int32
    tbbox = tbbox_ref[...].astype(jnp.float32)     # (4, M, T)

    C, T = logits.shape
    M = tcls.shape[0]

    # ---- first valid detection per image (valid := class != -1) ----
    # With M on sublanes this is a cheap sublane min-reduce.
    valid = tcls != -1                                             # (M, T)
    iota_m = lax.broadcasted_iota(jnp.int32, (M, T), 0)
    first_idx = jnp.min(jnp.where(valid, iota_m, M), axis=0, keepdims=True)  # (1, T)
    first = iota_m == first_idx                                    # (M, T); all-False if none

    # class target (0 if no valid detection), bbox target (zeros if none)
    cls_t = jnp.sum(jnp.where(first, tcls, 0), axis=0,
                    keepdims=True).astype(jnp.int32)               # (1, T)
    box_t = jnp.sum(jnp.where(first[None, :, :], tbbox, 0.0), axis=1)  # (4, T)

    # ---- per-example cross entropy: logsumexp - picked logit ----
    mx = jnp.max(logits, axis=0, keepdims=True)                    # (1, T)
    lse = jnp.log(jnp.sum(jnp.exp(logits - mx), axis=0, keepdims=True)) + mx
    iota_c = lax.broadcasted_iota(jnp.int32, (C, T), 0)
    picked = jnp.sum(jnp.where(iota_c == cls_t, logits, 0.0),
                     axis=0, keepdims=True)                        # (1, T)
    ce = lse - picked                                              # (1, T)

    # ---- per-example SmoothL1 (beta=1.0) summed over the 4 coords ----
    d = pred - box_t
    ad = jnp.abs(d)
    sl1 = jnp.sum(jnp.where(ad < 1.0, 0.5 * d * d, ad - 0.5),
                  axis=0, keepdims=True)                           # (1, T)

    # Lane-dense full-tile store: row 0 = CE, row 1 = SL1-sum, rows 2..7 = 0.
    row = lax.broadcasted_iota(jnp.int32, (8, T), 0)
    out_ref[...] = jnp.where(row == 0, ce, jnp.where(row == 1, sl1, 0.0))


def _round_up(x, m):
    return (x + m - 1) // m * m


def detection_loss(class_logits, pred_bboxes, target_classes, target_bboxes,
                   lambda_reg=LAMBDA_REG):
    B, C = class_logits.shape
    M = target_classes.shape[1]

    target_classes = target_classes.astype(jnp.int32)

    # ---- pick batch tile (lanes) from a VMEM working-set budget ----
    bytes_per_example = (C * class_logits.dtype.itemsize
                         + 4 * pred_bboxes.dtype.itemsize
                         + M * target_classes.dtype.itemsize
                         + 4 * M * target_bboxes.dtype.itemsize
                         + 8 * 4)  # output row block
    tile_cap = max(_LANE,
                   (_VMEM_WORKING_SET_BUDGET // (2 * bytes_per_example))
                   // _LANE * _LANE)
    tile_b = min(tile_cap, _round_up(B, _LANE))
    Bp = _round_up(B, tile_b)
    num_tiles = Bp // tile_b

    # ---- lane-dense layout (batch -> lane axis); layout plumbing done in XLA ----
    logits_t = class_logits.T                                # (C, B)
    pred_t = pred_bboxes.T                                   # (4, B)
    tcls_t = target_classes.T                                # (M, B)
    tbbox_t = jnp.transpose(target_bboxes, (2, 1, 0))        # (4, M, B)

    pad = Bp - B
    if pad:
        logits_t = jnp.pad(logits_t, ((0, 0), (0, pad)))
        pred_t = jnp.pad(pred_t, ((0, 0), (0, pad)))
        tcls_t = jnp.pad(tcls_t, ((0, 0), (0, pad)), constant_values=-1)
        tbbox_t = jnp.pad(tbbox_t, ((0, 0), (0, 0), (0, pad)))

    parts = pl.pallas_call(
        _detection_loss_kernel,
        out_shape=jax.ShapeDtypeStruct((8, Bp), jnp.float32),
        grid=(num_tiles,),
        in_specs=[
            pl.BlockSpec((C, tile_b), lambda i: (0, i)),
            pl.BlockSpec((4, tile_b), lambda i: (0, i)),
            pl.BlockSpec((M, tile_b), lambda i: (0, i)),
            pl.BlockSpec((4, M, tile_b), lambda i: (0, 0, i)),
        ],
        out_specs=pl.BlockSpec((8, tile_b), lambda i: (0, i)),
        compiler_params=pltpu.CompilerParams(
            dimension_semantics=("parallel",),
            vmem_limit_bytes=32 * 1024 * 1024,
        ),
    )(logits_t, pred_t, tcls_t, tbbox_t)

    # Tiny final reduction in XLA (drops the padded batch columns).
    ce_per_ex = parts[0, :B]
    sl1_per_ex = parts[1, :B]
    ce = jnp.mean(ce_per_ex)
    sl1 = jnp.sum(sl1_per_ex) / jnp.float32(4 * B)
    return ce + jnp.float32(lambda_reg) * sl1


def detection_loss_ref(class_logits, pred_bboxes, target_classes, target_bboxes):
    """Pure-JAX reference mirroring the PyTorch module."""
    B, C = class_logits.shape
    M = target_classes.shape[1]
    valid = target_classes != -1
    iota_m = jnp.arange(M)[None, :]
    first_idx = jnp.min(jnp.where(valid, iota_m, M), axis=1, keepdims=True)
    onehot = iota_m == first_idx
    cls_t = jnp.sum(jnp.where(onehot, target_classes, 0), axis=1)
    box_t = jnp.sum(jnp.where(onehot[:, :, None], target_bboxes, 0.0), axis=1)
    lse = jax.nn.logsumexp(class_logits, axis=1)
    picked = jnp.take_along_axis(class_logits, cls_t[:, None], axis=1)[:, 0]
    ce = jnp.mean(lse - picked)
    d = pred_bboxes - box_t
    ad = jnp.abs(d)
    sl1 = jnp.mean(jnp.where(ad < 1.0, 0.5 * d * d, ad - 0.5))
    return ce + LAMBDA_REG * sl1


if __name__ == "__main__":
    key = jax.random.PRNGKey(0)
    k1, k2, k3, k4 = jax.random.split(key, 4)

    B, C, M = 8, 8, 8  # batch, num_classes, max_boxes

    class_logits = jax.random.normal(k1, (B, C), dtype=jnp.float32)
    pred_bboxes = jax.random.normal(k2, (B, 4), dtype=jnp.float32)
    target_classes = jax.random.randint(k3, (B, M), -1, C, dtype=jnp.int32)
    # make one image have no valid detections to exercise the fallback path
    # (matches the reference: class target 0, bbox target zeros)
    target_classes = target_classes.at[0].set(-1)
    target_bboxes = jax.random.normal(k4, (B, M, 4), dtype=jnp.float32)

    loss = detection_loss(class_logits, pred_bboxes, target_classes, target_bboxes)
    loss = jax.block_until_ready(loss)

    ref = detection_loss_ref(class_logits, pred_bboxes, target_classes, target_bboxes)
    assert jnp.allclose(loss, ref, rtol=1e-5, atol=1e-5), (loss, ref)

    print("KERNEL_OK")
</pallas_src>

<mosaic_0001>
module attributes {stable_mosaic.version = 11 : i64} {
  func.func @_detection_loss_kernel(%arg0: i32, %arg1: memref<8x128xf32, #tpu.memory_space<vmem>>, %arg2: memref<4x128xf32, #tpu.memory_space<vmem>>, %arg3: memref<8x128xi32, #tpu.memory_space<vmem>>, %arg4: memref<4x8x128xf32, #tpu.memory_space<vmem>>, %arg5: memref<8x128xf32, #tpu.memory_space<vmem>>) attributes {dimension_semantics = [#tpu.dimension_semantics<parallel>], iteration_bounds = array<i64: 1>, scalar_prefetch = 0 : i64, scratch_operands = 0 : i64, tpu.core_type = #tpu.core_type<tc>, window_params = [{transform_indices = @transform_0, window_bounds = array<i64: 8, 128>}, {transform_indices = @transform_1, window_bounds = array<i64: 4, 128>}, {transform_indices = @transform_2, window_bounds = array<i64: 8, 128>}, {transform_indices = @transform_3, window_bounds = array<i64: 4, 8, 128>}, {transform_indices = @transform_4, window_bounds = array<i64: 8, 128>}]} {
    %c0 = arith.constant 0 : index
    %c0_0 = arith.constant 0 : index
    %0 = vector.load %arg1[%c0, %c0_0] : memref<8x128xf32, #tpu.memory_space<vmem>>, vector<8x128xf32>
    %c0_1 = arith.constant 0 : index
    %c0_2 = arith.constant 0 : index
    %1 = vector.load %arg2[%c0_1, %c0_2] : memref<4x128xf32, #tpu.memory_space<vmem>>, vector<4x128xf32>
    %c0_3 = arith.constant 0 : index
    %c0_4 = arith.constant 0 : index
    %2 = vector.load %arg3[%c0_3, %c0_4] : memref<8x128xi32, #tpu.memory_space<vmem>>, vector<8x128xi32>
    %c0_5 = arith.constant 0 : index
    %c0_6 = arith.constant 0 : index
    %c0_7 = arith.constant 0 : index
    %3 = vector.load %arg4[%c0_5, %c0_6, %c0_7] : memref<4x8x128xf32, #tpu.memory_space<vmem>>, vector<4x8x128xf32>
    %c-1_i32 = arith.constant -1 : i32
    %4 = vector.broadcast %c-1_i32 : i32 to vector<8x128xi32>
    %5 = arith.cmpi ne, %2, %4 : vector<8x128xi32>
    %6 = tpu.iota {dimensions = array<i32: 0>} : vector<8x128xi32>
    %c8_i32 = arith.constant 8 : i32
    %7 = vector.broadcast %c8_i32 : i32 to vector<8x128xi32>
    %8 = arith.select %5, %6, %7 : vector<8x128xi1>, vector<8x128xi32>
    %cst = arith.constant dense<2147483647> : vector<128xi32>
    %9 = vector.multi_reduction <minsi>, %8, %cst [0] : vector<8x128xi32> to vector<128xi32>
    %10 = vector.shape_cast %9 : vector<128xi32> to vector<1x128xi32>
    %11 = vector.broadcast %10 : vector<1x128xi32> to vector<8x128xi32>
    %12 = arith.cmpi eq, %6, %11 : vector<8x128xi32>
    %c0_i32 = arith.constant 0 : i32
    %13 = vector.broadcast %c0_i32 : i32 to vector<8x128xi32>
    %14 = arith.select %12, %2, %13 : vector<8x128xi1>, vector<8x128xi32>
    %cst_8 = arith.constant dense<0> : vector<128xi32>
    %15 = vector.multi_reduction <add>, %14, %cst_8 [0] : vector<8x128xi32> to vector<128xi32>
    %16 = vector.shape_cast %15 : vector<128xi32> to vector<1x128xi32>
    %17 = vector.shape_cast %12 : vector<8x128xi1> to vector<1x8x128xi1>
    %cst_9 = arith.constant 0.000000e+00 : f32
    %18 = vector.shape_cast %17 : vector<1x8x128xi1> to vector<1x8x128xi1>
    %19 = vector.broadcast %18 : vector<1x8x128xi1> to vector<4x8x128xi1>
    %20 = vector.broadcast %cst_9 : f32 to vector<4x8x128xf32>
    %21 = arith.select %19, %3, %20 : vector<4x8x128xi1>, vector<4x8x128xf32>
    %cst_10 = arith.constant dense<0.000000e+00> : vector<4x128xf32>
    %22 = vector.multi_reduction <add>, %21, %cst_10 [1] : vector<4x8x128xf32> to vector<4x128xf32>
    %cst_11 = arith.constant dense<0xFF800000> : vector<128xf32>
    %23 = vector.multi_reduction <maximumf>, %0, %cst_11 [0] : vector<8x128xf32> to vector<128xf32>
    %24 = vector.shape_cast %23 : vector<128xf32> to vector<1x128xf32>
    %25 = vector.broadcast %24 : vector<1x128xf32> to vector<8x128xf32>
    %26 = arith.subf %0, %25 : vector<8x128xf32>
    %27 = math.exp %26 : vector<8x128xf32>
    %cst_12 = arith.constant dense<0.000000e+00> : vector<128xf32>
    %28 = vector.multi_reduction <add>, %27, %cst_12 [0] : vector<8x128xf32> to vector<128xf32>
    %29 = vector.shape_cast %28 : vector<128xf32> to vector<1x128xf32>
    %30 = math.log %29 : vector<1x128xf32>
    %31 = arith.addf %30, %24 : vector<1x128xf32>
    %32 = tpu.iota {dimensions = array<i32: 0>} : vector<8x128xi32>
    %33 = vector.broadcast %16 : vector<1x128xi32> to vector<8x128xi32>
    %34 = arith.cmpi eq, %32, %33 : vector<8x128xi32>
    %cst_13 = arith.constant 0.000000e+00 : f32
    %35 = vector.broadcast %cst_13 : f32 to vector<8x128xf32>
    %36 = arith.select %34, %0, %35 : vector<8x128xi1>, vector<8x128xf32>
    %cst_14 = arith.constant dense<0.000000e+00> : vector<128xf32>
    %37 = vector.multi_reduction <add>, %36, %cst_14 [0] : vector<8x128xf32> to vector<128xf32>
    %38 = vector.shape_cast %37 : vector<128xf32> to vector<1x128xf32>
    %39 = arith.subf %31, %38 : vector<1x128xf32>
    %40 = arith.subf %1, %22 : vector<4x128xf32>
    %41 = math.absf %40 : vector<4x128xf32>
    %cst_15 = arith.constant 1.000000e+00 : f32
    %42 = vector.broadcast %cst_15 : f32 to vector<4x128xf32>
    %43 = arith.cmpf olt, %41, %42 : vector<4x128xf32>
    %cst_16 = arith.constant 5.000000e-01 : f32
    %44 = vector.broadcast %cst_16 : f32 to vector<4x128xf32>
    %45 = arith.mulf %44, %40 : vector<4x128xf32>
    %46 = arith.mulf %45, %40 : vector<4x128xf32>
    %cst_17 = arith.constant 5.000000e-01 : f32
    %47 = vector.broadcast %cst_17 : f32 to vector<4x128xf32>
    %48 = arith.subf %41, %47 : vector<4x128xf32>
    %49 = arith.select %43, %46, %48 : vector<4x128xi1>, vector<4x128xf32>
    %cst_18 = arith.constant dense<0.000000e+00> : vector<128xf32>
    %50 = vector.multi_reduction <add>, %49, %cst_18 [0] : vector<4x128xf32> to vector<128xf32>
    %51 = vector.shape_cast %50 : vector<128xf32> to vector<1x128xf32>
    %52 = tpu.iota {dimensions = array<i32: 0>} : vector<8x128xi32>
    %c0_i32_19 = arith.constant 0 : i32
    %53 = vector.broadcast %c0_i32_19 : i32 to vector<8x128xi32>
    %54 = arith.cmpi eq, %52, %53 : vector<8x128xi32>
    %c1_i32 = arith.constant 1 : i32
    %55 = vector.broadcast %c1_i32 : i32 to vector<8x128xi32>
    %56 = arith.cmpi eq, %52, %55 : vector<8x128xi32>
    %cst_20 = arith.constant 0.000000e+00 : f32
    %57 = vector.shape_cast %51 : vector<1x128xf32> to vector<1x128xf32>
    %58 = vector.broadcast %57 : vector<1x128xf32> to vector<8x128xf32>
    %59 = vector.broadcast %cst_20 : f32 to vector<8x128xf32>
    %60 = arith.select %56, %58, %59 : vector<8x128xi1>, vector<8x128xf32>
    %61 = vector.shape_cast %39 : vector<1x128xf32> to vector<1x128xf32>
    %62 = vector.broadcast %61 : vector<1x128xf32> to vector<8x128xf32>
    %63 = arith.select %54, %62, %60 : vector<8x128xi1>, vector<8x128xf32>
    %c0_21 = arith.constant 0 : index
    %c0_22 = arith.constant 0 : index
    %64 = vector.load %arg5[%c0_21, %c0_22] : memref<8x128xf32, #tpu.memory_space<vmem>>, vector<8x128xf32>
    tpu.vector_store %arg5[%c0_21, %c0_22], %63 {strides = array<i32>} : memref<8x128xf32, #tpu.memory_space<vmem>>, vector<8x128xf32>,
    return
  }
  func.func @transform_0(%arg0: i32) -> (i32, i32) {
    %c0_i32 = arith.constant 0 : i32
    %c0_i32_0 = arith.constant 0 : i32
    return %c0_i32, %arg0 : i32, i32
  }
  func.func @transform_1(%arg0: i32) -> (i32, i32) {
    %c0_i32 = arith.constant 0 : i32
    %c0_i32_0 = arith.constant 0 : i32
    return %c0_i32, %arg0 : i32, i32
  }
  func.func @transform_2(%arg0: i32) -> (i32, i32) {
    %c0_i32 = arith.constant 0 : i32
    %c0_i32_0 = arith.constant 0 : i32
    return %c0_i32, %arg0 : i32, i32
  }
  func.func @transform_3(%arg0: i32) -> (i32, i32, i32) {
    %c0_i32 = arith.constant 0 : i32
    %c0_i32_0 = arith.constant 0 : i32
    %c0_i32_1 = arith.constant 0 : i32
    return %c0_i32, %c0_i32_0, %arg0 : i32, i32, i32
  }
  func.func @transform_4(%arg0: i32) -> (i32, i32) {
    %c0_i32 = arith.constant 0 : i32
    %c0_i32_0 = arith.constant 0 : i32
    return %c0_i32, %arg0 : i32, i32
  }
}

</mosaic_0001>

<bundles_post_ra>
// kernel: tpu_custom_call.1
= control target key start
LH: loop header
LB: loop body
LE: loop exit
PB: predicated region body
PF: predicated region fallthrough
CT: control target
= control target key end

     0   :  { %9 = vsyncpa [#allocation3], 0  ;;  %s446_s0 = inlined_call_operand.hbm [shape: f32[8,128], index: 0, kind: input, shape index: {}]   ;;  %s447_s1 = inlined_call_operand.hbm [shape: f32[4,128], index: 1, kind: input, shape index: {}]   ;;  %s448_s2 = inlined_call_operand.hbm [shape: s32[8,128], index: 2, kind: input, shape index: {}]   ;;  %s449_s3 = inlined_call_operand.hbm [shape: f32[4,8,128], index: 3, kind: input, shape index: {}]   ;;  %s450_s4 = inlined_call_operand.hbm [shape: f32[8,128], index: 4, kind: output, shape index: {}]  }
   0x1   :  { %10 = vsyncpa [#allocation6], 0 }
   0x2   :  { %11 = vsyncpa [#allocation9], 0 }
   0x3   :  { %12 = vsyncpa [#allocation4], 0  ;;  %s330_s15 = smov [#allocation5]   ;;  %s331_s17 = smov [#allocation2]  }
   0x4   :  { %s29_s16 = sshll.u32 %s330_s15, 4  ;;  %s19_s18 = sshll.u32 %s331_s17, 4  ;;  %s30_s16 = int_to_ptr.vmem [resolvable:$true] %s29_s16  ;;  %s20_s18 = int_to_ptr.vmem [resolvable:$true] %s19_s18 }
   0x5   :  { %s212_s21 = scalar_lea.hbm %s447_s1, 64 }
   0x6   :  { %p213_p0 = scmp.ne.s32.totalorder %s447_s1, %s212_s21  ;;  %p216_p1 = scmp.lt.u32.totalorder %s212_s21, %s447_s1 }
   0x8   :  { %p218_p2 = pnand %p216_p1, %p213_p0 }
   0xa   :  { %221 = shalt.err (!%p218_p2)
}
   0xb   :  { %s222_s26 = scalar_lea.vmem %s30_s16, 64  ;;  %p227_p4 = scmp.lt.s32.totalorder %s30_s16, %s30_s16 }
   0xc   :  { %p223_p3 = scmp.ne.s32.totalorder %s30_s16, %s222_s26  ;;  %p228_p5 = scmp.lt.s32.totalorder %s222_s26, %s222_s26 }
   0xe   :  { %p229_p6 = por %p228_p5, %p227_p4 }
  0x10   :  { %p230_p7 = pnand %p229_p6, %p223_p3 }
  0x12   :  { %233 = shalt.err (!%p230_p7)
}
  0x13   :  { %32 = dma.hbm_to_vmem [thread:$0]  %s447_s1, 64, %s30_s16, [#allocation6]  }
  0x14   :  { %s234_s5 = scalar_lea.hbm %s446_s0, 128 }
  0x15   :  { %p235_p8 = scmp.ne.s32.totalorder %s446_s0, %s234_s5  ;;  %p238_p9 = scmp.lt.u32.totalorder %s234_s5, %s446_s0 }
  0x17   :  { %p240_p10 = pnand %p238_p9, %p235_p8 }
  0x19   :  { %243 = shalt.err (!%p240_p10)
}
  0x1a   :  { %s244_s10 = scalar_lea.vmem %s20_s18, 128  ;;  %p249_p12 = scmp.lt.s32.totalorder %s20_s18, %s20_s18 }
  0x1b   :  { %p245_p11 = scmp.ne.s32.totalorder %s20_s18, %s244_s10  ;;  %p250_p13 = scmp.lt.s32.totalorder %s244_s10, %s244_s10 }
  0x1d   :  { %p251_p0 = por %p250_p13, %p249_p12 }
  0x1f   :  { %p252_p1 = pnand %p251_p0, %p245_p11 }
  0x21   :  { %255 = shalt.err (!%p252_p1)
}
  0x22   :  { %22 = dma.hbm_to_vmem [thread:$0]  %s446_s0, 128, %s20_s18, [#allocation3]  }
  0x23   :  { %s332_s12 = smov [#allocation7]   ;;  %s333_s14 = smov [#allocation8]  }
  0x24   :  { %s39_s13 = sshll.u32 %s332_s12, 4  ;;  %s48_s15 = sshll.u32 %s333_s14, 4  ;;  %s40_s13 = int_to_ptr.vmem [resolvable:$true] %s39_s13  ;;  %s386_s15 = int_to_ptr.vmem [resolvable:$true] %s48_s15 }
  0x25   :  { %s256_s19 = scalar_lea.hbm %s448_s2, 128 }
  0x26   :  { %p257_p2 = scmp.ne.s32.totalorder %s448_s2, %s256_s19  ;;  %p260_p3 = scmp.lt.u32.totalorder %s256_s19, %s448_s2 }
  0x28   :  { %p262_p4 = pnand %p260_p3, %p257_p2 }
  0x2a   :  { %265 = shalt.err (!%p262_p4)
}
  0x2b   :  { %s266_s0 = scalar_lea.vmem %s40_s13, 128  ;;  %p271_p6 = scmp.lt.s32.totalorder %s40_s13, %s40_s13 }
  0x2c   :  { %p267_p5 = scmp.ne.s32.totalorder %s40_s13, %s266_s0  ;;  %p272_p7 = scmp.lt.s32.totalorder %s266_s0, %s266_s0 }
  0x2e   :  { %p273_p8 = por %p272_p7, %p271_p6 }
  0x30   :  { %p274_p9 = pnand %p273_p8, %p267_p5 }
  0x32   :  { %277 = shalt.err (!%p274_p9)
}
  0x33   :  { %42 = dma.hbm_to_vmem [thread:$0]  %s448_s2, 128, %s40_s13, [#allocation6]  }
  0x34   :  { %s278_s27 = scalar_lea.hbm %s449_s3, 512 }
  0x35   :  { %p279_p10 = scmp.ne.s32.totalorder %s449_s3, %s278_s27  ;;  %p282_p11 = scmp.lt.u32.totalorder %s278_s27, %s449_s3 }
  0x37   :  { %p284_p12 = pnand %p282_p11, %p279_p10 }
  0x39   :  { %287 = shalt.err (!%p284_p12)
}
  0x3a   :  { %s288_s6 = scalar_lea.vmem %s386_s15, 512  ;;  %p293_p0 = scmp.lt.s32.totalorder %s386_s15, %s386_s15 }
  0x3b   :  { %p289_p13 = scmp.ne.s32.totalorder %s386_s15, %s288_s6  ;;  %p294_p1 = scmp.lt.s32.totalorder %s288_s6, %s288_s6 }
  0x3d   :  { %p295_p2 = por %p294_p1, %p293_p0 }
  0x3f   :  { %p296_p3 = pnand %p295_p2, %p289_p13 }
  0x41   :  { %299 = shalt.err (!%p296_p3)
}
  0x42   :  { %s334_s2 = smov 128   ;;  %s335_s7 = smov 8  }
  0x43   :  { %54 = dma.hbm_to_vmem [thread:$0]  %s449_s3, 512, %s386_s15, [#allocation9], %s334_s2, %s334_s2, %s335_s7  }
  0x44   :  { %322 = dma.done.wait [#allocation3], 128  }
  0x45   :  { %323 = vsyncadd [#allocation3], 4294967168 }
  0x46   :  { %324 = dma.done.wait [#allocation6], 192  }
  0x47   :  { %325 = vsyncadd [#allocation6], 4294967104 }
  0x48   :  { %326 = dma.done.wait [#allocation9], 512  }
  0x49   :  { %327 = vsyncadd [#allocation9], 4294966784  ;;  %v75_v0 = vlaneseq  ;;  %v419_v2 = vld [vmem:[#allocation2] sm:$0xff]  ;;  %v69_v3 = vld [vmem:[#allocation7] sm:$0xff]  ;;  %vm156_vm5 = vcmask 1041409   ;;  %vm158_vm6 = vcmask 1042434  }
  0x4a   :  { %vm74_vm0 = vcmp.ne.s32.totalorder %v69_v3, 4294967295  ;;  %v125_v4 = vrot.slane %v419_v2, 4  ;;  %v70_v16 = vld [vmem:[#allocation8] sm:$0xff]  ;;  %v71_v17 = vld [vmem:[#allocation8 + $0x8] sm:$0xff]  ;;  %v72_v18 = vld [vmem:[#allocation8 + $0x10] sm:$0xff]  ;;  %vm160_vm7 = vcmask 1043459  }
  0x4b   :  { %v417_v1 = vshrl.u32 %v75_v0, 7  ;;  %v73_v20 = vld [vmem:[#allocation8 + $0x18] sm:$0xff]  ;;  %v68_v59 = vld [vmem:[#allocation5] sm:$0xf]  ;;  %vm170_vm9 = vcmask 1043456   ;;  %s336_s3 = smov [#allocation10]  }
  0x4c   :  { %v126_v7 = vmax.f32 %v419_v2, %v125_v4  ;;  %s189_s10 = sshll.u32 %s336_s3, 4  ;;  %s190_s10 = int_to_ptr.vmem [resolvable:$true] %s189_s10 }
  0x4d   :  { %v77_v5 = vsel %vm74_vm0, %v417_v1, 8  ;;  %vm179_vm11 = vcmp.eq.s32.totalorder %v417_v1, 1  ;;  %vm178_vm12 = vcmp.eq.s32.totalorder %v417_v1, 0  ;;  %s300_s1 = scalar_lea.vmem %s190_s10, 128  ;;  %p305_p5 = scmp.lt.s32.totalorder %s190_s10, %s190_s10 }
  0x4e   :  { %v78_v6 = vrot.slane %v77_v5, 4  ;;  %v127_v8 = vrot.slane %v126_v7, 2  ;;  %p301_p4 = scmp.ne.s32.totalorder %s190_s10, %s300_s1  ;;  %p306_p6 = scmp.lt.s32.totalorder %s300_s1, %s300_s1 }
  0x50   :  { %vm79_vm1 = vcmp.lt.s32.totalorder %v77_v5, %v78_v6  ;;  %v128_v11 = vmax.f32 %v126_v7, %v127_v8  ;;  %p307_p7 = por %p306_p6, %p305_p5 }
  0x51   :  { %v80_v9 = vsel %vm79_vm1, %v77_v5, %v78_v6 }
  0x52   :  { %v81_v10 = vrot.slane %v80_v9, 2  ;;  %v129_v12 = vrot.slane %v128_v11, 1  ;;  %p308_p8 = pnand %p307_p7, %p301_p4 }
  0x54   :  { %vm82_vm2 = vcmp.lt.s32.totalorder %v80_v9, %v81_v10  ;;  %v424_v15 = vmax.f32 %v128_v11, %v129_v12 }
  0x55   :  { %v83_v13 = vsel %vm82_vm2, %v80_v9, %v81_v10 }
  0x56   :  { %v84_v14 = vrot.slane %v83_v13, 1  ;;  %v131_v19 = vsub.f32 %v419_v2, %v424_v15 }
  0x58   :  { %vm85_vm3 = vcmp.lt.s32.totalorder %v83_v13, %v84_v14  ;;  %v132_v22 = vmul.f32 1.442695, %v131_v19 }
  0x59   :  { %v86_v21 = vsel %vm85_vm3, %v83_v13, %v84_v14 }
  0x5a   :  { %vm87_vm4 = vcmp.eq.s32.totalorder %v417_v1, %v86_v21  ;;  %208 = vpow2.f32 %v132_v22 }
  0x5b   :  { %v88_v23 = vsel %vm87_vm4, %v69_v3, 0  ;;  %v97_v24 = vsel %vm87_vm4, %v70_v16, 0.0  ;;  %v98_v25 = vsel %vm87_vm4, %v71_v17, 0.0  ;;  %v99_v26 = vsel %vm87_vm4, %v72_v18, 0.0 }
  0x5c   :  { %v89_v27 = vrot.slane %v88_v23, 4  ;;  %v100_v28 = vsel %vm87_vm4, %v73_v20, 0.0  ;;  %v101_v29 = vrot.slane %v97_v24, 4  ;;  %v107_v30 = vrot.slane %v98_v25, 4 }
  0x5d   :  { %v113_v31 = vrot.slane %v99_v26, 4  ;;  %v119_v32 = vrot.slane %v100_v28, 4 }
  0x5e   :  { %v90_v33 = vadd.s32 %v89_v27, %v88_v23  ;;  %v102_v34 = vadd.f32 %v101_v29, %v97_v24  ;;  %v108_v35 = vadd.f32 %v107_v30, %v98_v25 }
  0x5f   :  { %v114_v36 = vadd.f32 %v113_v31, %v99_v26  ;;  %v120_v37 = vadd.f32 %v119_v32, %v100_v28 }
  0x60   :  { %v91_v38 = vrot.slane %v90_v33, 2  ;;  %v103_v39 = vrot.slane %v102_v34, 2  ;;  %v109_v40 = vrot.slane %v108_v35, 2 }
  0x61   :  { %v115_v41 = vrot.slane %v114_v36, 2  ;;  %v121_v42 = vrot.slane %v120_v37, 2 }
  0x62   :  { %v92_v43 = vadd.s32 %v91_v38, %v90_v33  ;;  %v104_v44 = vadd.f32 %v103_v39, %v102_v34  ;;  %v110_v45 = vadd.f32 %v109_v40, %v108_v35 }
  0x63   :  { %v116_v46 = vadd.f32 %v115_v41, %v114_v36  ;;  %v122_v47 = vadd.f32 %v121_v42, %v120_v37 }
  0x64   :  { %v93_v48 = vrot.slane %v92_v43, 1  ;;  %v105_v49 = vrot.slane %v104_v44, 1  ;;  %v111_v50 = vrot.slane %v110_v45, 1  ;;  %v209_v56 = vpop.eup %208 }
  0x65   :  { %v117_v51 = vrot.slane %v116_v46, 1  ;;  %v123_v52 = vrot.slane %v122_v47, 1  ;;  %v134_v60 = vrot.slane %v209_v56, 4 }
  0x66   :  { %v94_v53 = vadd.s32 %v93_v48, %v92_v43  ;;  %v106_v54 = vadd.f32 %v105_v49, %v104_v44  ;;  %v112_v55 = vadd.f32 %v111_v50, %v110_v45 }
  0x67   :  { %v118_v57 = vadd.f32 %v117_v51, %v116_v46  ;;  %v124_v58 = vadd.f32 %v123_v52, %v122_v47  ;;  %v135_v0 = vadd.f32 %v209_v56, %v134_v60 }
  0x68   :  { %vm143_vm8 = vcmp.eq.s32.totalorder %v417_v1, %v94_v53  ;;  %v157_v61 = vsel %vm156_vm5, %v112_v55, %v106_v54 }
  0x69   :  { %v144_v62 = vsel %vm143_vm8, %v419_v2, 0.0  ;;  %v159_v63 = vsel %vm158_vm6, %v118_v57, %v157_v61  ;;  %v136_v6 = vrot.slane %v135_v0, 2 }
  0x6a   :  { %v161_v3 = vsel %vm160_vm7, %v124_v58, %v159_v63  ;;  %v145_v4 = vrot.slane %v144_v62, 4 }
  0x6b   :  { %v163_v5 = vsub.f32 %v68_v59, %v161_v3  ;;  %v137_v9 = vadd.f32 %v136_v6, %v135_v0 }
  0x6c   :  { %v146_v10 = vadd.f32 %v145_v4, %v144_v62 }
  0x6d   :  { %v164_v7 = vand.u32 2147483647, %v163_v5  ;;  %v166_v8 = vmul.f32 0.5, %v163_v5  ;;  %v138_v13 = vrot.slane %v137_v9, 1 }
  0x6e   :  { %v147_v18 = vrot.slane %v146_v10, 2 }
  0x6f   :  { %vm165_vm10 = vcmp.lt.f32.partialorder %v164_v7, 1.0  ;;  %v167_v11 = vmul.f32 %v166_v8, %v163_v5  ;;  %v200_v12 = vadd.f32 -0.5, %v164_v7  ;;  %v139_v16 = vadd.f32 %v138_v13, %v137_v9 }
  0x70   :  { %v148_v20 = vadd.f32 %v147_v18, %v146_v10 }
  0x71   :  { %v169_v14 = vsel %vm165_vm10, %v167_v11, %v200_v12  ;;  %210 = vlog2.f32 %v139_v16 }
  0x72   :  { %v171_v17 = vsel %vm170_vm9, %v169_v14, 0.0  ;;  %v149_v23 = vrot.slane %v148_v20, 1 }
  0x73   :  { %v172_v2 = vrot.slane %v171_v17, 4 }
  0x74   :  { %v150_v28 = vadd.f32 %v149_v23, %v148_v20 }
  0x75   :  { %v173_v19 = vadd.f32 %v172_v2, %v171_v17 }
  0x77   :  { %v174_v21 = vrot.slane %v173_v19, 2 }
  0x79   :  { %v175_v22 = vadd.f32 %v174_v21, %v173_v19 }
  0x7b   :  { %v176_v24 = vrot.slane %v175_v22, 1  ;;  %v211_v25 = vpop.eup %210 }
  0x7c   :  { %v141_v27 = vmul.f32 0.6931472, %v211_v25 }
  0x7d   :  { %v177_v26 = vadd.f32 %v176_v24, %v175_v22 }
  0x7e   :  { %v142_v29 = vadd.f32 %v141_v27, %v424_v15 }
  0x7f   :  { %v180_v30 = vsel %vm179_vm11, %v177_v26, 0.0 }
  0x80   :  { %v151_v31 = vsub.f32 %v142_v29, %v150_v28 }
  0x82   :  { %v181_v32 = vsel %vm178_vm12, %v151_v31, %v180_v30 }
  0x83   :  { %182 = vst [vmem:[#allocation10] sm:$0xff] %v181_v32 }
  0x84   :  { %311 = shalt.err (!%p308_p8)
}
  0x85   :  { %s312_s13 = scalar_lea.hbm %s450_s4, 128 }
  0x86   :  { %p313_p9 = scmp.ne.s32.totalorder %s450_s4, %s312_s13  ;;  %p316_p10 = scmp.lt.u32.totalorder %s312_s13, %s450_s4 }
  0x88   :  { %p318_p11 = pnand %p316_p10, %p313_p9 }
  0x8a   :  { %321 = shalt.err (!%p318_p11)
}
  0x8b   :  { %192 = dma.vmem_to_hbm [thread:$0]  %s190_s10, 128, %s450_s4, [#allocation4]  }
  0x8c   :  { %328 = dma.done.wait [#allocation4], 128  }
  0x8d   :  { %329 = vsyncadd [#allocation4], 4294967168 }
  0x8e   :  { %196 = vsyncpa [#allocation3], 1 }
  0x8f   :  { %197 = vsyncpa [#allocation6], 1 }
  0x90   :  { %198 = vsyncpa [#allocation9], 1 }
  0x91   :  { %199 = vsyncpa [#allocation4], 1 }

</bundles_post_ra>
